<compile_context>
chip_gen: v7x
topology: tpu7x:2x2x1
jax: 0.10.0
libtpu: 0.0.40
codegen_flags: <defaults>
</compile_context>

<pallas_src>
import functools

import jax
import jax.numpy as jnp
from jax.experimental import pallas as pl
from jax.experimental.pallas import tpu as pltpu


def _compiler_params(dims, vmem_limit_bytes=None):
    if vmem_limit_bytes is None:
        return pltpu.CompilerParams(dimension_semantics=dims)
    return pltpu.CompilerParams(dimension_semantics=dims,
                                vmem_limit_bytes=vmem_limit_bytes)


# ---------------------------------------------------------------------------
# Per-head input projection: y = x @ W^T (same (D, D) weight for every head,
# exactly as the PyTorch module's nn.Linear(head_dim, head_dim)).
# x is pre-arranged host-side to (N*heads, L, D) so this is a plain 2-D GEMM
# per tile and downstream consumers get head-major data with no lane slicing.
# ---------------------------------------------------------------------------
def _proj_kernel(x_ref, w_ref, o_ref, *, scale):
    y = jnp.dot(x_ref[0], w_ref[...], preferred_element_type=jnp.float32)
    if scale != 1.0:
        y = y * scale                      # applied in f32 (Q only)
    o_ref[0] = y.astype(o_ref.dtype)


def _project(x_bld, w_t, *, scale=1.0, seq_tile=None, vmem_limit_bytes=None):
    """x_bld: (N*heads, L, D) bf16; w_t: (D, D) bf16 (pre-transposed)."""
    B, L, D = x_bld.shape
    tl = L if seq_tile is None else min(seq_tile, L)
    assert L % tl == 0
    kernel = functools.partial(_proj_kernel, scale=scale)
    return pl.pallas_call(
        kernel,
        out_shape=jax.ShapeDtypeStruct((B, L, D), jnp.bfloat16),
        grid_spec=pltpu.PrefetchScalarGridSpec(
            num_scalar_prefetch=0,
            grid=(B, L // tl),
            in_specs=[
                pl.BlockSpec((1, tl, D), lambda b, l: (b, l, 0)),
                pl.BlockSpec((D, D), lambda b, l: (0, 0)),
            ],
            out_specs=pl.BlockSpec((1, tl, D), lambda b, l: (b, l, 0)),
        ),
        compiler_params=_compiler_params(("parallel", "parallel"),
                                         vmem_limit_bytes),
    )(x_bld, w_t)


# ---------------------------------------------------------------------------
# Flash-style attention over pre-projected, head-major Q/K/V + fused fc_out.
# Grid: (N, Lq//tq, Lk//tk); KV axis innermost ("arbitrary").
# ---------------------------------------------------------------------------
def _attn_kernel(q_ref, k_ref, v_ref, wo_ref, b_ref, o_ref,
                 m_ref, l_ref, acc_ref, *, heads):
    ki = pl.program_id(2)
    nk = pl.num_programs(2)

    @pl.when(ki == 0)
    def _init():
        m_ref[...] = jnp.full_like(m_ref, -jnp.inf)
        l_ref[...] = jnp.zeros_like(l_ref)
        acc_ref[...] = jnp.zeros_like(acc_ref)

    q = q_ref[...]            # (H, tq, D) bf16, 1/sqrt(E) already folded in
    k = k_ref[...]            # (H, tk, D) bf16
    v = v_ref[...]            # (H, tk, D) bf16

    # Head-batched Q @ K^T with f32 accumulation on the MXU.
    e = jnp.einsum('hqd,hkd->hqk', q, k,
                   preferred_element_type=jnp.float32)          # (H, tq, tk)

    m_prev = m_ref[...]                                         # (H, tq, 1)
    m_new = jnp.maximum(m_prev, jnp.max(e, axis=-1, keepdims=True))
    alpha = jnp.exp(m_prev - m_new)
    p = jnp.exp(e - m_new)                                      # (H, tq, tk) f32
    l_ref[...] = alpha * l_ref[...] + jnp.sum(p, axis=-1, keepdims=True)
    acc_ref[...] = alpha * acc_ref[...] + jnp.einsum(
        'hqk,hkd->hqd', p.astype(jnp.bfloat16), v,
        preferred_element_type=jnp.float32)
    m_ref[...] = m_new

    @pl.when(ki == nk - 1)
    def _finalize():
        # Exact normalization (runs once per output tile).
        ctx = (acc_ref[...] / l_ref[...]).astype(jnp.bfloat16)  # (H, tq, D)
        tq = ctx.shape[1]
        e_out = wo_ref.shape[-1]
        # fc_out without materializing the head concat:
        #   out = sum_h ctx[h] @ Wo[h]   (major-axis slices of resident Wo)
        out = jnp.zeros((tq, e_out), jnp.float32)
        for h in range(heads):
            out = out + jnp.dot(ctx[h], wo_ref[h],
                                preferred_element_type=jnp.float32)
        out = out + b_ref[...]
        o_ref[0] = out.astype(o_ref.dtype)


def self_attention(keys, values, queries, wk, wv, wq, w_fc, b_fc, *, heads,
                   q_tile=None, k_tile=None, proj_tile=None,
                   vmem_limit_bytes=None):
    """Pallas-backed SelfAttention.forward(keys, values, queries, mask=None)."""
    N, Lq, E = queries.shape
    Lk = keys.shape[1]
    D = E // heads
    assert D * heads == E, "embed_size must be divisible by heads"
    assert values.shape[1] == Lk, "key_len and value_len must match"
    scale = 1.0 / float(E) ** 0.5

    # Tile sizes.  Guidance: tq = tk ~ 512 on v5e/v6e (128 MiB VMEM), ~256 on
    # v7x (64 MiB VMEM); pass vmem_limit_bytes to raise the scoped limit when
    # growing tiles.  TODO(synk): ragged (non-divisible) sequence tails.
    tq = Lq if q_tile is None else min(q_tile, Lq)
    tk = Lk if k_tile is None else min(k_tile, Lk)
    assert Lq % tq == 0 and Lk % tk == 0

    def to_head_major(x, L):
        # (N, L, E) -> (N*heads, L, D).  Cast to bf16 first so the one-time
        # XLA transpose and all kernel DMA move half the bytes.
        return (x.astype(jnp.bfloat16)
                 .reshape(N, L, heads, D)
                 .transpose(0, 2, 1, 3)
                 .reshape(N * heads, L, D))

    q_hm = to_head_major(queries, Lq)
    k_hm = to_head_major(keys, Lk)
    v_hm = to_head_major(values, Lk)

    wq_t = wq.T.astype(jnp.bfloat16)      # (D_in, D_out)
    wk_t = wk.T.astype(jnp.bfloat16)
    wv_t = wv.T.astype(jnp.bfloat16)

    # Pre-project Q/K/V exactly once (no per-q-tile recomputation of K/V).
    q_p = _project(q_hm, wq_t, scale=scale, seq_tile=proj_tile or tq,
                   vmem_limit_bytes=vmem_limit_bytes)
    k_p = _project(k_hm, wk_t, seq_tile=proj_tile or tk,
                   vmem_limit_bytes=vmem_limit_bytes)
    v_p = _project(v_hm, wv_t, seq_tile=proj_tile or tk,
                   vmem_limit_bytes=vmem_limit_bytes)

    # fc_out: y = ctx_flat @ w_fc.T + b;  reshape w_fc.T to (heads, D, E) so the
    # kernel consumes per-head row blocks with major-axis slices only.
    wo = w_fc.T.reshape(heads, D, E).astype(jnp.bfloat16)
    b2 = b_fc.reshape(1, E).astype(jnp.float32)

    kernel = functools.partial(_attn_kernel, heads=heads)
    grid = (N, Lq // tq, Lk // tk)

    return pl.pallas_call(
        kernel,
        out_shape=jax.ShapeDtypeStruct((N, Lq, E), queries.dtype),
        grid_spec=pltpu.PrefetchScalarGridSpec(
            num_scalar_prefetch=0,
            grid=grid,
            in_specs=[
                # (N*heads, L, D) arrays; dim-0 block of size `heads` selects
                # batch n's heads (block index n -> rows n*heads .. (n+1)*heads).
                pl.BlockSpec((heads, tq, D), lambda n, qi, ki: (n, qi, 0)),  # Q
                pl.BlockSpec((heads, tk, D), lambda n, qi, ki: (n, ki, 0)),  # K
                pl.BlockSpec((heads, tk, D), lambda n, qi, ki: (n, ki, 0)),  # V
                pl.BlockSpec((heads, D, E), lambda n, qi, ki: (0, 0, 0)),    # Wo
                pl.BlockSpec((1, E), lambda n, qi, ki: (0, 0)),              # bias
            ],
            out_specs=pl.BlockSpec((1, tq, E), lambda n, qi, ki: (n, qi, 0)),
            scratch_shapes=[
                pltpu.VMEM((heads, tq, 1), jnp.float32),   # running max
                pltpu.VMEM((heads, tq, 1), jnp.float32),   # running denom
                pltpu.VMEM((heads, tq, D), jnp.float32),   # context accumulator
            ],
        ),
        compiler_params=_compiler_params(
            ("parallel", "parallel", "arbitrary"), vmem_limit_bytes),
    )(q_p, k_p, v_p, wo, b2)


def reference(keys, values, queries, wk, wv, wq, w_fc, b_fc, heads):
    """Pure-JAX transcription of the PyTorch forward (sanity check)."""
    N, Lq, E = queries.shape
    D = E // heads

    def split(x):
        return x.reshape(N, -1, heads, D)

    k = split(keys) @ wk.T
    v = split(values) @ wv.T
    q = split(queries) @ wq.T
    energy = jnp.einsum('nqhd,nkhd->nhqk', q, k)
    attn = jax.nn.softmax(energy / (E ** 0.5), axis=3)
    out = jnp.einsum('nhql,nlhd->nqhd', attn, v).reshape(N, Lq, E)
    return out @ w_fc.T + b_fc


if __name__ == "__main__":
    N, L, E, H = 2, 16, 32, 4          # batch, seq, embed_size, heads
    D = E // H

    key = jax.random.PRNGKey(0)
    kq, kk, kv, kwq, kwk, kwv, kwo, kb = jax.random.split(key, 8)

    queries = jax.random.normal(kq, (N, L, E), dtype=jnp.float32)
    keys_in = jax.random.normal(kk, (N, L, E), dtype=jnp.float32)
    values_in = jax.random.normal(kv, (N, L, E), dtype=jnp.float32)

    # Deterministic parameter init (shapes follow the nn.Module __init__).
    wq = jax.random.normal(kwq, (D, D), dtype=jnp.float32) * 0.1
    wk = jax.random.normal(kwk, (D, D), dtype=jnp.float32) * 0.1
    wv = jax.random.normal(kwv, (D, D), dtype=jnp.float32) * 0.1
    w_fc = jax.random.normal(kwo, (E, E), dtype=jnp.float32) * 0.1
    b_fc = jax.random.normal(kb, (E,), dtype=jnp.float32) * 0.1

    # Small tiles so the test exercises multiple q-tiles and multiple KV steps
    # of the online softmax.
    out = self_attention(keys_in, values_in, queries, wk, wv, wq, w_fc, b_fc,
                         heads=H, q_tile=8, k_tile=8)
    out = jax.block_until_ready(out)

    ref = reference(keys_in, values_in, queries, wk, wv, wq, w_fc, b_fc, H)
    assert out.shape == (N, L, E)
    assert jnp.allclose(out, ref, atol=3e-2, rtol=3e-2), "mismatch vs reference"

    print("KERNEL_OK")
</pallas_src>

<mosaic_0001>
module attributes {stable_mosaic.version = 11 : i64} {
  func.func @_proj_kernel(%arg0: i32, %arg1: i32, %arg2: memref<1x8x8xbf16, #tpu.memory_space<vmem>>, %arg3: memref<8x8xbf16, #tpu.memory_space<vmem>>, %arg4: memref<1x8x8xbf16, #tpu.memory_space<vmem>>) attributes {dimension_semantics = [#tpu.dimension_semantics<parallel>, #tpu.dimension_semantics<parallel>], iteration_bounds = array<i64: 8, 2>, scalar_prefetch = 0 : i64, scratch_operands = 0 : i64, tpu.core_type = #tpu.core_type<tc>, window_params = [{transform_indices = @transform_0, window_bounds = array<i64: 1, 8, 8>}, {pipeline_mode = #tpu.pipeline_mode<synchronous>, transform_indices = @transform_1, window_bounds = array<i64: 8, 8>}, {transform_indices = @transform_2, window_bounds = array<i64: 1, 8, 8>}]} {
    %c0 = arith.constant 0 : index
    %c0_0 = arith.constant 0 : index
    %c0_1 = arith.constant 0 : index
    %0 = vector.load %arg2[%c0, %c0_0, %c0_1] : memref<1x8x8xbf16, #tpu.memory_space<vmem>>, vector<1x8x8xbf16>
    %1 = vector.shape_cast %0 : vector<1x8x8xbf16> to vector<8x8xbf16>
    %c0_2 = arith.constant 0 : index
    %c0_3 = arith.constant 0 : index
    %2 = vector.load %arg3[%c0_2, %c0_3] : memref<8x8xbf16, #tpu.memory_space<vmem>>, vector<8x8xbf16>
    %cst = arith.constant dense<0.000000e+00> : vector<8x8xf32>
    %3 = tpu.matmul %1, %2, %cst {dimension_numbers = #tpu.dot_dimension_numbers<[1], [0], [0], [1], [0, 0, 1, 1], [], []>} : vector<8x8xbf16>, vector<8x8xbf16>, vector<8x8xf32> -> vector<8x8xf32>
    %cst_4 = arith.constant 0.176776692 : f32
    %4 = vector.broadcast %cst_4 : f32 to vector<8x8xf32>
    %5 = arith.mulf %3, %4 : vector<8x8xf32>
    %6 = arith.truncf %5 : vector<8x8xf32> to vector<8x8xbf16>
    %c0_5 = arith.constant 0 : index
    %c0_6 = arith.constant 0 : index
    %c0_7 = arith.constant 0 : index
    %7 = vector.load %arg4[%c0_5, %c0_6, %c0_7] : memref<1x8x8xbf16, #tpu.memory_space<vmem>>, vector<1x8x8xbf16>
    %8 = vector.shape_cast %7 : vector<1x8x8xbf16> to vector<8x8xbf16>
    %9 = vector.shape_cast %6 : vector<8x8xbf16> to vector<1x8x8xbf16>
    tpu.vector_store %arg4[%c0_5, %c0_6, %c0_7], %9 {strides = array<i32>} : memref<1x8x8xbf16, #tpu.memory_space<vmem>>, vector<1x8x8xbf16>,
    return
  }
  func.func @transform_0(%arg0: i32, %arg1: i32) -> (i32, i32, i32) {
    %c0_i32 = arith.constant 0 : i32
    %c0_i32_0 = arith.constant 0 : i32
    return %arg0, %arg1, %c0_i32 : i32, i32, i32
  }
  func.func @transform_1(%arg0: i32, %arg1: i32) -> (i32, i32) {
    %c0_i32 = arith.constant 0 : i32
    %c0_i32_0 = arith.constant 0 : i32
    %c0_i32_1 = arith.constant 0 : i32
    return %c0_i32, %c0_i32_0 : i32, i32
  }
  func.func @transform_2(%arg0: i32, %arg1: i32) -> (i32, i32, i32) {
    %c0_i32 = arith.constant 0 : i32
    %c0_i32_0 = arith.constant 0 : i32
    return %arg0, %arg1, %c0_i32 : i32, i32, i32
  }
}

</mosaic_0001>

<bundles_post_ra>
// kernel: tpu_custom_call.1
= control target key start
LH: loop header
LB: loop body
LE: loop exit
PB: predicated region body
PF: predicated region fallthrough
CT: control target
= control target key end

     0   :  { %s435_s9 = smov 0   ;;  %s437_s10 = smov 0   ;;  %s489_s0 = inlined_call_operand.vmem [shape: bf16[8,16,8], index: 0, kind: input, shape index: {}]   ;;  %s490_s1 = inlined_call_operand.vmem [shape: bf16[8,8], index: 1, kind: input, shape index: {}]   ;;  %s491_s2 = inlined_call_operand.vmem [shape: bf16[8,16,8], index: 2, kind: output, shape index: {}]  }
   0x1   :  { %s439_s11 = smov 0   ;;  %s441_s12 = smov 0  }
   0x2   :  { %s443_s13 = smov 0  }
   0x3 LB: > { %s21_s14 = sadd.s32 1, %s408_s11  ;;  %s24_s15 = sadd.s32 1, %s412_s12  ;;  %s416_s13 = sphi %s443_s13, %s12_s13   ;;  %s412_s12 = sphi %s441_s12, %s495_s12   ;;  %s408_s11 = sphi %s439_s11, %s494_s11   ;;  %s404_s10 = sphi %s437_s10, %s493_s10   ;;  %s400_s9 = sphi %s435_s9, %s492_s9  }
   0x4   : > { %p22_p0 = scmp.ge.s32.totalorder %s21_s14, 2  ;;  %p320_p1 = scmp.ge.s32.totalorder %s416_s13, 1 }
   0x5   : > { %p131_p2 = scmp.lt.s32.totalorder %s416_s13, 17 }
   0x6   : > { %s497_s14 = smov (%p22_p0, %s21_s14), 0  ;;  %s499_s15 = smov (!%p22_p0, %s24_s15), %s412_s12 }
   0x7   : > { %p132_p3 = pnand %p320_p1, %p131_p2  ;;  %p26_p4 = scmp.ge.s32.totalorder %s499_s15, 8 }
   0x8   : > { %v177_v0 = vld [vmem:[%s490_s1] sm:$0xf] (!%p132_p3)  ;;  %vm182_vm0 = vcmask (!%p132_p3), 1043456   ;;  %p159_p5 = scmp.lt.s32.totalorder (!%p132_p3), %s404_s10, 7  ;;  %v418_v1 = vmov (!%p132_p3), 0.0   ;;  %vm419_vm1 = vmmov (!%p132_p3), 0  }
   0x9   : > { %s501_s15 = smov (%p26_p4, %s499_s15), 0  ;;  %135 = sbr.rel (%p132_p3) target bundleno = 239 (0xef), region = 28 }
   0xa   : > { %330 = vmatprep.subr.bf16.mxu0 (!%p132_p3), %v418_v1  ;;  %v184_v2 = vsel (!%p132_p3), %vm182_vm0, %v177_v0, 0  ;;  %332 = vmatprep.mubr.msk.bf16.mxu0 (!%p132_p3), %vm419_vm1, %v418_v1  ;;  %p161_p6 = scmp.lt.s32.totalorder (!%p132_p3), %s400_s9, 1  ;;  %vm178_vm2 = vcmask (!%p132_p3), 64512   ;;  %vm228_vm3 = vcmask (!%p132_p3), 60416  }
   0xb   : > { %331 = vmatpush3.bf16.msra.mxu0 (!%p132_p3), %v184_v2 }
  0x10   : > { %s503_s10 = smov (!%p159_p5, %s404_s10), 7  ;;  %s505_s9 = smov (!%p161_p6, %s400_s9), 1 }
  0x11   : > { %s321_s18 = sshll.u32 %s503_s10, 1 }
  0x12   : > { %s164_s19 = sadd.s32 %s321_s18, %s505_s9 }
  0x13   : > { %s322_s20 = sshll.u32 %s164_s19, 2 }
  0x14   : > { %s166_s23 = scalar_lea.vmem %s489_s0, %s322_s20  ;;  %s174_s26 = scalar_lea.vmem %s491_s2, %s322_s20 }
  0x15   : > { %v176_v3 = vld [vmem:[%s166_s23] sm:$0xf] }
  0x16   : > { %333 = vmatmul.mubr.msk.bf16.vlgmr.msra.gmra.mrb[0].mxu0 %vm178_vm2, %v176_v3 }
  0xe9   : > { %v220_v4 = vpop.f32.mrb[0].mxu0 }
  0xea   : > { %v226_v5 = vmul.f32 0.17677669, %v220_v4  ;;  %v334_v6 = vpop.f32.mrb[1].mxu0 }
  0xeb   : > { %v223_v7 = vpop.f32.mrb[2].mxu0 }
  0xec   : > { %v227_v8 = vpack.c.bf16 %v226_v5, %v226_v5  ;;  %v335_v9 = vpop.f32.mrb[3].mxu0 }
  0xee   : > { %229 = vst.msk [vmem:[%s174_s26] sm:$0xf] %vm228_vm3, %v227_v8 }
  0xef PF: > { %s12_s13 = sadd.s32 1, %s416_s13   ;;  %s492_s9 = smov %s408_s11 }
  0xf0   : > { %p9_p7 = scmp.ge.s32.totalorder %s12_s13, 18   ;;  %s493_s10 = smov %s412_s12 }
  0xf1   : > { %s494_s11 = smov %s497_s14  ;;  %s495_s12 = smov %s501_s15 }
  0xf2   :  { %11 = sbr.rel (!%p9_p7) target bundleno = 3 (0x3), region = 58 }

</bundles_post_ra>
